<compile_context>
chip_gen: v6e
topology: v6e:2x2x1
jax: 0.10.0
libtpu: 0.0.40
codegen_flags: <defaults>
</compile_context>

<pallas_src>
import functools

import jax
import jax.numpy as jnp
from jax.experimental import pallas as pl
from jax.experimental.pallas import tpu as pltpu


def _flash_attn_kernel(q_ref, k_ref, v_ref, o_ref, m_sc, l_sc, acc_sc, *, seq_k):
    # q_ref: (1, TQ, H, E)  k_ref: (1, TS, H, E)  v_ref: (1, TS, H, D)
    # o_ref: (1, TQ, H, D)
    # m_sc/l_sc: (H, TQ, 1) f32   acc_sc: (H, TQ, D) f32
    j = pl.program_id(2)

    @pl.when(j == 0)
    def _():
        m_sc[...] = jnp.full(m_sc.shape, -jnp.inf, dtype=jnp.float32)
        l_sc[...] = jnp.zeros(l_sc.shape, dtype=jnp.float32)
        acc_sc[...] = jnp.zeros(acc_sc.shape, dtype=jnp.float32)

    e = q_ref.shape[-1]
    scale = float(e) ** -0.5

    # Head-major views for batched per-head MXU matmuls.  These swaps keep the
    # minor (lane) dim in place -- sublane shuffles only, no HBM traffic.
    qh = pltpu.einshape("qhe->hqe", q_ref[0] * scale)   # (H, TQ, E), input dtype
    kh = pltpu.einshape("she->hse", k_ref[0])           # (H, TS, E)
    vh = pltpu.einshape("shd->hsd", v_ref[0])           # (H, TS, D)

    # Scores for this (L tile, S tile): (H, TQ, TS), f32 accumulation on MXU.
    s = jnp.einsum("hqe,hse->hqs", qh, kh, preferred_element_type=jnp.float32)

    ts = k_ref.shape[1]
    if seq_k % ts != 0:
        # Mask the padded tail of the last S tile so softmax stats stay valid.
        col = j * ts + jax.lax.broadcasted_iota(jnp.int32, (1, 1, ts), 2)
        s = jnp.where(col < seq_k, s, -jnp.inf)

    # Online softmax update.
    m_prev = m_sc[...]
    m_new = jnp.maximum(m_prev, jnp.max(s, axis=-1, keepdims=True))
    alpha = jnp.exp(m_prev - m_new)
    p = jnp.exp(s - m_new)                               # (H, TQ, TS) f32
    l_sc[...] = alpha * l_sc[...] + jnp.sum(p, axis=-1, keepdims=True)
    acc_sc[...] = alpha * acc_sc[...] + jnp.einsum(
        "hqs,hsd->hqd", p.astype(v_ref.dtype), vh,
        preferred_element_type=jnp.float32)
    m_sc[...] = m_new

    @pl.when(j == pl.num_programs(2) - 1)
    def _():
        inv_l = pl.reciprocal(l_sc[...], approx=True)    # EUP slot, ~free
        out_h = acc_sc[...] * inv_l                      # (H, TQ, D) f32
        o_ref[0] = pltpu.einshape("hqd->qhd", out_h).astype(o_ref.dtype)


def attention_pallas(q, k, v, *, tq=256, ts=256):
    """q: (B, L, H, E), k: (B, S, H, E), v: (B, S, H, D) -> (B, L, H, D)."""
    B, L, H, E = q.shape
    _, S, _, D = v.shape
    tq = min(tq, L)
    ts = min(ts, S)
    grid = (B, pl.cdiv(L, tq), pl.cdiv(S, ts))

    kernel = functools.partial(_flash_attn_kernel, seq_k=S)

    return pl.pallas_call(
        kernel,
        out_shape=jax.ShapeDtypeStruct((B, L, H, D), q.dtype),
        grid_spec=pltpu.PrefetchScalarGridSpec(
            num_scalar_prefetch=0,
            grid=grid,
            in_specs=[
                pl.BlockSpec((1, tq, H, E), lambda b, i, j: (b, i, 0, 0)),
                pl.BlockSpec((1, ts, H, E), lambda b, i, j: (b, j, 0, 0)),
                pl.BlockSpec((1, ts, H, D), lambda b, i, j: (b, j, 0, 0)),
            ],
            out_specs=pl.BlockSpec((1, tq, H, D), lambda b, i, j: (b, i, 0, 0)),
            scratch_shapes=[
                pltpu.VMEM((H, tq, 1), jnp.float32),   # running max
                pltpu.VMEM((H, tq, 1), jnp.float32),   # running sum
                pltpu.VMEM((H, tq, D), jnp.float32),   # output accumulator
            ],
        ),
        compiler_params=pltpu.CompilerParams(
            dimension_semantics=("parallel", "parallel", "arbitrary"),
            # 48 MiB: above the v5e/v6e scoped defaults, >=25% headroom under
            # v7x's 64 MiB physical VMEM.  TQ=TS=256 keeps the working set to a
            # few MiB; tq/ts can be raised to 512 on v5e/v6e.
            vmem_limit_bytes=48 * 1024 * 1024,
        ),
    )(q, k, v)


def attention_ref(q, k, v):
    """Pure-JAX reference (mirrors the PyTorch forward, eval mode)."""
    E = q.shape[-1]
    scores = jnp.einsum('blhe,bshe->bhls', q, k) * (E ** -0.5)
    attn = jax.nn.softmax(scores, axis=-1)
    return jnp.einsum('bhls,bshd->blhd', attn, v)


if __name__ == "__main__":
    key = jax.random.PRNGKey(0)
    kq, kk, kv = jax.random.split(key, 3)

    B, L, S, H, E, D = 2, 8, 8, 4, 32, 32
    q = jax.random.normal(kq, (B, L, H, E), dtype=jnp.float32)
    k = jax.random.normal(kk, (B, S, H, E), dtype=jnp.float32)
    v = jax.random.normal(kv, (B, S, H, D), dtype=jnp.float32)

    out = attention_pallas(q, k, v)
    out = jax.block_until_ready(out)

    ref = attention_ref(q, k, v)
    assert out.shape == (B, L, H, D), out.shape
    err = jnp.max(jnp.abs(out - ref))
    # approx (EUP) reciprocal in the softmax normalizer -> ~1e-3 relative tol.
    assert jnp.allclose(out, ref, atol=2e-3, rtol=2e-3), f"max abs err {err}"

    print("KERNEL_OK")
</pallas_src>

<mosaic_0001>
module attributes {stable_mosaic.version = 11 : i64} {
  func.func @_flash_attn_kernel(%arg0: i32, %arg1: i32, %arg2: i32, %arg3: memref<1x8x4x32xf32, #tpu.memory_space<vmem>>, %arg4: memref<1x8x4x32xf32, #tpu.memory_space<vmem>>, %arg5: memref<1x8x4x32xf32, #tpu.memory_space<vmem>>, %arg6: memref<1x8x4x32xf32, #tpu.memory_space<vmem>>, %arg7: memref<4x8x1xf32, #tpu.memory_space<vmem>>, %arg8: memref<4x8x1xf32, #tpu.memory_space<vmem>>, %arg9: memref<4x8x32xf32, #tpu.memory_space<vmem>>) attributes {dimension_semantics = [#tpu.dimension_semantics<parallel>, #tpu.dimension_semantics<parallel>, #tpu.dimension_semantics<arbitrary>], iteration_bounds = array<i64: 2, 1, 1>, scalar_prefetch = 0 : i64, scratch_operands = 3 : i64, tpu.core_type = #tpu.core_type<tc>, window_params = [{transform_indices = @transform_0, window_bounds = array<i64: 1, 8, 4, 32>}, {transform_indices = @transform_1, window_bounds = array<i64: 1, 8, 4, 32>}, {transform_indices = @transform_2, window_bounds = array<i64: 1, 8, 4, 32>}, {transform_indices = @transform_3, window_bounds = array<i64: 1, 8, 4, 32>}]} {
    %c0_i32 = arith.constant 0 : i32
    %0 = arith.cmpi eq, %arg2, %c0_i32 : i32
    %1 = arith.extui %0 : i1 to i32
    %c0_i32_0 = arith.constant 0 : i32
    %2 = arith.cmpi ne, %1, %c0_i32_0 : i32
    scf.if %2 {
      %cst_36 = arith.constant 0xFF800000 : f32
      %40 = vector.broadcast %cst_36 : f32 to vector<4x8x1xf32>
      %c0_37 = arith.constant 0 : index
      %c0_38 = arith.constant 0 : index
      %c0_39 = arith.constant 0 : index
      %41 = vector.load %arg7[%c0_37, %c0_38, %c0_39] : memref<4x8x1xf32, #tpu.memory_space<vmem>>, vector<4x8x1xf32>
      tpu.vector_store %arg7[%c0_37, %c0_38, %c0_39], %40 {strides = array<i32>} : memref<4x8x1xf32, #tpu.memory_space<vmem>>, vector<4x8x1xf32>,
      %cst_40 = arith.constant 0.000000e+00 : f32
      %42 = vector.broadcast %cst_40 : f32 to vector<4x8x1xf32>
      %c0_41 = arith.constant 0 : index
      %c0_42 = arith.constant 0 : index
      %c0_43 = arith.constant 0 : index
      %43 = vector.load %arg8[%c0_41, %c0_42, %c0_43] : memref<4x8x1xf32, #tpu.memory_space<vmem>>, vector<4x8x1xf32>
      tpu.vector_store %arg8[%c0_41, %c0_42, %c0_43], %42 {strides = array<i32>} : memref<4x8x1xf32, #tpu.memory_space<vmem>>, vector<4x8x1xf32>,
      %cst_44 = arith.constant 0.000000e+00 : f32
      %44 = vector.broadcast %cst_44 : f32 to vector<4x8x32xf32>
      %c0_45 = arith.constant 0 : index
      %c0_46 = arith.constant 0 : index
      %c0_47 = arith.constant 0 : index
      %45 = vector.load %arg9[%c0_45, %c0_46, %c0_47] : memref<4x8x32xf32, #tpu.memory_space<vmem>>, vector<4x8x32xf32>
      tpu.vector_store %arg9[%c0_45, %c0_46, %c0_47], %44 {strides = array<i32>} : memref<4x8x32xf32, #tpu.memory_space<vmem>>, vector<4x8x32xf32>,
    } else {
    }
    %c0 = arith.constant 0 : index
    %c0_1 = arith.constant 0 : index
    %c0_2 = arith.constant 0 : index
    %c0_3 = arith.constant 0 : index
    %3 = vector.load %arg3[%c0, %c0_1, %c0_2, %c0_3] : memref<1x8x4x32xf32, #tpu.memory_space<vmem>>, vector<1x8x4x32xf32>
    %4 = vector.shape_cast %3 : vector<1x8x4x32xf32> to vector<8x4x32xf32>
    %cst = arith.constant 0.176776692 : f32
    %5 = vector.broadcast %cst : f32 to vector<8x4x32xf32>
    %6 = arith.mulf %4, %5 : vector<8x4x32xf32>
    %7 = tpu.transpose %6, [1, 0, 2] : vector<8x4x32xf32> -> vector<4x8x32xf32>
    %c0_4 = arith.constant 0 : index
    %c0_5 = arith.constant 0 : index
    %c0_6 = arith.constant 0 : index
    %c0_7 = arith.constant 0 : index
    %8 = vector.load %arg4[%c0_4, %c0_5, %c0_6, %c0_7] : memref<1x8x4x32xf32, #tpu.memory_space<vmem>>, vector<1x8x4x32xf32>
    %9 = vector.shape_cast %8 : vector<1x8x4x32xf32> to vector<8x4x32xf32>
    %10 = tpu.transpose %9, [1, 0, 2] : vector<8x4x32xf32> -> vector<4x8x32xf32>
    %c0_8 = arith.constant 0 : index
    %c0_9 = arith.constant 0 : index
    %c0_10 = arith.constant 0 : index
    %c0_11 = arith.constant 0 : index
    %11 = vector.load %arg5[%c0_8, %c0_9, %c0_10, %c0_11] : memref<1x8x4x32xf32, #tpu.memory_space<vmem>>, vector<1x8x4x32xf32>
    %12 = vector.shape_cast %11 : vector<1x8x4x32xf32> to vector<8x4x32xf32>
    %13 = tpu.transpose %12, [1, 0, 2] : vector<8x4x32xf32> -> vector<4x8x32xf32>
    "tpu.trace_start"() <{level = 10 : i32, message = "hqe,hse->hqs"}> : () -> ()
    %cst_12 = arith.constant dense<0.000000e+00> : vector<4x8x8xf32>
    %14 = tpu.matmul %7, %10, %cst_12 {dimension_numbers = #tpu.dot_dimension_numbers<[2], [2], [1], [1], [0, 0, 0, 1, 1, 1], [0], [0]>} : vector<4x8x32xf32>, vector<4x8x32xf32>, vector<4x8x8xf32> -> vector<4x8x8xf32>
    "tpu.trace_stop"() : () -> ()
    %c0_13 = arith.constant 0 : index
    %c0_14 = arith.constant 0 : index
    %c0_15 = arith.constant 0 : index
    %15 = vector.load %arg7[%c0_13, %c0_14, %c0_15] : memref<4x8x1xf32, #tpu.memory_space<vmem>>, vector<4x8x1xf32>
    %cst_16 = arith.constant dense<0xFF800000> : vector<4x8xf32>
    %16 = vector.multi_reduction <maximumf>, %14, %cst_16 [2] : vector<4x8x8xf32> to vector<4x8xf32>
    %17 = vector.shape_cast %16 : vector<4x8xf32> to vector<4x8x1xf32>
    %18 = arith.maximumf %15, %17 : vector<4x8x1xf32>
    %19 = arith.subf %15, %18 : vector<4x8x1xf32>
    %20 = math.exp %19 : vector<4x8x1xf32>
    %21 = vector.broadcast %18 : vector<4x8x1xf32> to vector<4x8x8xf32>
    %22 = arith.subf %14, %21 : vector<4x8x8xf32>
    %23 = math.exp %22 : vector<4x8x8xf32>
    %c0_17 = arith.constant 0 : index
    %c0_18 = arith.constant 0 : index
    %c0_19 = arith.constant 0 : index
    %24 = vector.load %arg8[%c0_17, %c0_18, %c0_19] : memref<4x8x1xf32, #tpu.memory_space<vmem>>, vector<4x8x1xf32>
    %25 = arith.mulf %20, %24 : vector<4x8x1xf32>
    %cst_20 = arith.constant dense<0.000000e+00> : vector<4x8xf32>
    %26 = vector.multi_reduction <add>, %23, %cst_20 [2] : vector<4x8x8xf32> to vector<4x8xf32>
    %27 = vector.shape_cast %26 : vector<4x8xf32> to vector<4x8x1xf32>
    %28 = arith.addf %25, %27 : vector<4x8x1xf32>
    %c0_21 = arith.constant 0 : index
    %c0_22 = arith.constant 0 : index
    %c0_23 = arith.constant 0 : index
    %29 = vector.load %arg8[%c0_21, %c0_22, %c0_23] : memref<4x8x1xf32, #tpu.memory_space<vmem>>, vector<4x8x1xf32>
    tpu.vector_store %arg8[%c0_21, %c0_22, %c0_23], %28 {strides = array<i32>} : memref<4x8x1xf32, #tpu.memory_space<vmem>>, vector<4x8x1xf32>,
    %c0_24 = arith.constant 0 : index
    %c0_25 = arith.constant 0 : index
    %c0_26 = arith.constant 0 : index
    %30 = vector.load %arg9[%c0_24, %c0_25, %c0_26] : memref<4x8x32xf32, #tpu.memory_space<vmem>>, vector<4x8x32xf32>
    %31 = vector.broadcast %20 : vector<4x8x1xf32> to vector<4x8x32xf32>
    %32 = arith.mulf %31, %30 : vector<4x8x32xf32>
    "tpu.trace_start"() <{level = 10 : i32, message = "hqs,hsd->hqd"}> : () -> ()
    %cst_27 = arith.constant dense<0.000000e+00> : vector<4x8x32xf32>
    %33 = tpu.matmul %23, %13, %cst_27 {dimension_numbers = #tpu.dot_dimension_numbers<[2], [1], [1], [2], [0, 0, 0, 1, 1, 2], [0], [0]>} : vector<4x8x8xf32>, vector<4x8x32xf32>, vector<4x8x32xf32> -> vector<4x8x32xf32>
    "tpu.trace_stop"() : () -> ()
    %34 = arith.addf %32, %33 : vector<4x8x32xf32>
    %c0_28 = arith.constant 0 : index
    %c0_29 = arith.constant 0 : index
    %c0_30 = arith.constant 0 : index
    %35 = vector.load %arg9[%c0_28, %c0_29, %c0_30] : memref<4x8x32xf32, #tpu.memory_space<vmem>>, vector<4x8x32xf32>
    tpu.vector_store %arg9[%c0_28, %c0_29, %c0_30], %34 {strides = array<i32>} : memref<4x8x32xf32, #tpu.memory_space<vmem>>, vector<4x8x32xf32>,
    %c0_31 = arith.constant 0 : index
    %c0_32 = arith.constant 0 : index
    %c0_33 = arith.constant 0 : index
    %36 = vector.load %arg7[%c0_31, %c0_32, %c0_33] : memref<4x8x1xf32, #tpu.memory_space<vmem>>, vector<4x8x1xf32>
    tpu.vector_store %arg7[%c0_31, %c0_32, %c0_33], %18 {strides = array<i32>} : memref<4x8x1xf32, #tpu.memory_space<vmem>>, vector<4x8x1xf32>,
    %c0_i32_34 = arith.constant 0 : i32
    %37 = arith.cmpi eq, %arg2, %c0_i32_34 : i32
    %38 = arith.extui %37 : i1 to i32
    %c0_i32_35 = arith.constant 0 : i32
    %39 = arith.cmpi ne, %38, %c0_i32_35 : i32
    scf.if %39 {
      %c0_36 = arith.constant 0 : index
      %c0_37 = arith.constant 0 : index
      %c0_38 = arith.constant 0 : index
      %40 = vector.load %arg8[%c0_36, %c0_37, %c0_38] : memref<4x8x1xf32, #tpu.memory_space<vmem>>, vector<4x8x1xf32>
      %41 = tpu.reciprocal %40 {approx = true} : vector<4x8x1xf32> -> vector<4x8x1xf32>
      %c0_39 = arith.constant 0 : index
      %c0_40 = arith.constant 0 : index
      %c0_41 = arith.constant 0 : index
      %42 = vector.load %arg9[%c0_39, %c0_40, %c0_41] : memref<4x8x32xf32, #tpu.memory_space<vmem>>, vector<4x8x32xf32>
      %43 = vector.broadcast %41 : vector<4x8x1xf32> to vector<4x8x32xf32>
      %44 = arith.mulf %42, %43 : vector<4x8x32xf32>
      %45 = tpu.transpose %44, [1, 0, 2] : vector<4x8x32xf32> -> vector<8x4x32xf32>
      %c0_42 = arith.constant 0 : index
      %c0_43 = arith.constant 0 : index
      %c0_44 = arith.constant 0 : index
      %c0_45 = arith.constant 0 : index
      %46 = vector.load %arg6[%c0_42, %c0_43, %c0_44, %c0_45] : memref<1x8x4x32xf32, #tpu.memory_space<vmem>>, vector<1x8x4x32xf32>
      %47 = vector.shape_cast %46 : vector<1x8x4x32xf32> to vector<8x4x32xf32>
      %48 = vector.shape_cast %45 : vector<8x4x32xf32> to vector<1x8x4x32xf32>
      tpu.vector_store %arg6[%c0_42, %c0_43, %c0_44, %c0_45], %48 {strides = array<i32>} : memref<1x8x4x32xf32, #tpu.memory_space<vmem>>, vector<1x8x4x32xf32>,
    } else {
    }
    return
  }
  func.func @transform_0(%arg0: i32, %arg1: i32, %arg2: i32) -> (i32, i32, i32, i32) {
    %c0_i32 = arith.constant 0 : i32
    %c0_i32_0 = arith.constant 0 : i32
    %c0_i32_1 = arith.constant 0 : i32
    return %arg0, %arg1, %c0_i32, %c0_i32_0 : i32, i32, i32, i32
  }
  func.func @transform_1(%arg0: i32, %arg1: i32, %arg2: i32) -> (i32, i32, i32, i32) {
    %c0_i32 = arith.constant 0 : i32
    %c0_i32_0 = arith.constant 0 : i32
    %c0_i32_1 = arith.constant 0 : i32
    return %arg0, %arg2, %c0_i32, %c0_i32_0 : i32, i32, i32, i32
  }
  func.func @transform_2(%arg0: i32, %arg1: i32, %arg2: i32) -> (i32, i32, i32, i32) {
    %c0_i32 = arith.constant 0 : i32
    %c0_i32_0 = arith.constant 0 : i32
    %c0_i32_1 = arith.constant 0 : i32
    return %arg0, %arg2, %c0_i32, %c0_i32_0 : i32, i32, i32, i32
  }
  func.func @transform_3(%arg0: i32, %arg1: i32, %arg2: i32) -> (i32, i32, i32, i32) {
    %c0_i32 = arith.constant 0 : i32
    %c0_i32_0 = arith.constant 0 : i32
    %c0_i32_1 = arith.constant 0 : i32
    return %arg0, %arg1, %c0_i32, %c0_i32_0 : i32, i32, i32, i32
  }
}

</mosaic_0001>

<bundles_post_ra>
// kernel: tpu_custom_call.1
= control target key start
LH: loop header
LB: loop body
LE: loop exit
PB: predicated region body
PF: predicated region fallthrough
CT: control target
= control target key end

     0   :  { %s2393_s0 = inlined_call_operand.hbm [shape: f32[2,8,4,32], index: 0, kind: input, shape index: {}]   ;;  %s2394_s1 = inlined_call_operand.hbm [shape: f32[2,8,4,32], index: 1, kind: input, shape index: {}]   ;;  %s2395_s2 = inlined_call_operand.hbm [shape: f32[2,8,4,32], index: 2, kind: input, shape index: {}]   ;;  %s2396_s3 = inlined_call_operand.hbm [shape: f32[2,8,4,32], index: 3, kind: output, shape index: {}]  }
   0x1   :  { %2402 = sst [smem:[#allocation18_spill]] %s2394_s1 }
   0x2   :  { %8 = vsyncpa [#allocation6], 0 }
   0x3   :  { %10 = vsyncpa [#allocation6 + $0x1], 0 }
   0x4   :  { %11 = vsyncpa [#allocation9], 0 }
   0x5   :  { %13 = vsyncpa [#allocation9 + $0x1], 0 }
   0x6   :  { %14 = vsyncpa [#allocation7], 0 }
   0x7   :  { %16 = vsyncpa [#allocation7 + $0x1], 0  ;;  %s1974_s12 = smov 0   ;;  %s1976_s13 = smov 0  }
   0x8   :  { %s1978_s14 = smov 0   ;;  %s1980_s15 = smov 0  }
   0x9   :  { %s1982_s16 = smov 0   ;;  %s1984_s17 = smov 0  }
   0xa LB: > { %2403 = sst [smem:[#allocation15_spill]] %s1934_s16  ;;  %s2005_s18 = sadd.s32 4294967295, %s1938_s17   ;;  %s1938_s17 = sphi %s1984_s17, %s22_s17   ;;  %s1934_s16 = sphi %s1982_s16, %s2418_s16   ;;  %s1930_s15 = sphi %s1980_s15, %s2417_s15   ;;  %s1926_s14 = sphi %s1978_s14, %s2421_s14   ;;  %s1922_s13 = sphi %s1976_s13, %s2420_s13   ;;  %s1918_s12 = sphi %s1974_s12, %s2419_s12  }
   0xb   : > { %s1560_s19 = sadd.s32 4294967294, %s1938_s17   ;;  %s41_s20 = sadd.s32 1, %s1934_s16 }
   0xc   : > { %s50_s21 = sadd.s32 1, %s1926_s14  ;;  %p43_p0 = scmp.ge.s32.totalorder %s41_s20, 2 }
   0xd   : > { %p57_p1 = scmp.ne.s32.totalorder %s1926_s14, %s1922_s13  ;;  %p58_p2 = scmp.eq.s32.totalorder %s1938_s17, 0 }
   0xe   : > { %p63_p3 = scmp.ne.s32.totalorder %s1922_s13, %s1918_s12  ;;  %s2423_s20 = smov (%p43_p0, %s41_s20), 0 }
   0xf   : > { %2404 = sst [smem:[#allocation16_spill]] %s2423_s20  ;;  %p2017_p4 = por %p58_p2, %p57_p1 }
  0x10   : > { %p64_p5 = scmp.eq.s32.totalorder %s2005_s18, 0  ;;  %s45_s23 = ssub.s32 %s1934_s16, %s2423_s20 }
  0x11   : > { %p145_p6 = scmp.eq.s32.totalorder %s2005_s18, 1  ;;  %p48_p7 = scmp.eq.s32.totalorder %s45_s23, 0 }
  0x12   : > { %p2025_p8 = por %p64_p5, %p63_p3  ;;  %p151_p10 = scmp.eq.s32.totalorder %s1560_s19, 1 }
  0x13   : > { %p2029_p9 = por %p145_p6, %p57_p1  ;;  %p1676_p13 = scmp.lt.s32.totalorder %s1938_s17, 2 }
  0x14   : > { %s2034_s26 = scalar_select %p48_p7, %s1926_s14, %s50_s21  }
  0x15   : > { %p2036_p11 = por %p151_p10, %p63_p3  ;;  %s2397_s28 = sand.u32 1, %s1926_s14  }
  0x16   : > { %2408 = sst [smem:[#allocation17_spill]] %s2034_s26  ;;  %s2045_s29 = sshll.u32 %s2397_s28, 5 }
  0x17   : > { %s2048_s30 = sshll.u32 %s1934_s16, 9  ;;  %p2052_p0 = pnand %p1676_p13, %p2017_p4 }
  0x18   : > { %s194_s5 = sand.u32 1, %s1938_s17   ;;  %s2411_s1 = sld [smem:[#allocation18_spill]] }
  0x19   : > { %s198_s9 = scalar_lea.vmem [#allocation8], %s2045_s29  ;;  %p1572_p1 = scmp.ge.s32.totalorder %s1938_s17, 1 }
  0x1a   : > { %s207_s10 = sshll.u32 %s198_s9, 4  ;;  %p238_p2 = scmp.lt.s32.totalorder %s1938_s17, 3  ;;  %s208_s10 = int_to_ptr.vmem [resolvable:$true] %s207_s10 }
  0x1b   : > { %s2064_s11 = scalar_lea.sflag [#allocation9], %s194_s5  ;;  %p1772_p3 = pneg %p2052_p0 }
  0x1c   : > { %s1783_s19 = scalar_lea.vmem %s208_s10, 512  ;;  %s1940_s21 = smov [#allocation8]  }
  0x1d   : > { %p1784_p4 = scmp.ne.s32.totalorder %s208_s10, %s1783_s19  ;;  %s1788_s22 = sshll.u32 %s1940_s21, 4  ;;  %s1789_s22 = int_to_ptr.vmem [resolvable:$false] %s1788_s22 }
  0x1e   : > { %s206_s8 = scalar_lea.hbm %s2411_s1, %s2048_s30  ;;  %s1790_s23 = scalar_lea.vmem %s1789_s22, 1024 }
  0x1f   : > { %p1786_p5 = pnand %p1784_p4, %p1772_p3  ;;  %p1791_p7 = scmp.lt.s32.totalorder %s208_s10, %s1789_s22 }
  0x20   : > { %p1792_p10 = scmp.lt.s32.totalorder %s1790_s23, %s1783_s19 }
  0x21   : > { %p1787_p6 = pneg %p1786_p5 }
  0x22   : > { %p1793_p13 = por %p1792_p10, %p1791_p7 }
  0x24   : > { %p1794_p12 = pnand %p1793_p13, %p1787_p6 }
  0x26   : > { %1797 = shalt.err (!%p1794_p12)
}
  0x27   : > { %s2400_s6 = smov 64   ;;  %s1942_s5 = smov 4  }
  0x28   : > { %1668 = dma.hbm_to_vmem [thread:$0]  (!%p2052_p0), %s206_s8, 512, %s208_s10, %s2064_s11, %s2400_s6, %s2400_s6, %s1942_s5  }
  0x29   : > { %p2081_p4 = pnand %p1572_p1, %p238_p2  ;;  %s183_s21 = scalar_lea.hbm %s2393_s0, %s2048_s30 }
  0x2a   : > { %s175_s22 = scalar_lea.vmem [#allocation5], %s2045_s29  ;;  %s229_s20 = scalar_lea.hbm %s2395_s2, %s2048_s30 }
  0x2b   : > { %s184_s23 = sshll.u32 %s175_s22, 4  ;;  %s2413_s16 = sand.u32 1, %s1926_s14   ;;  %s185_s23 = int_to_ptr.vmem [resolvable:$true] %s184_s23 }
  0x2c   : > { %s172_s26 = scalar_lea.sflag [#allocation6], %s2413_s16  ;;  %s1811_s8 = scalar_lea.vmem %s185_s23, 512 }
  0x2d   : > { %p1812_p12 = scmp.ne.s32.totalorder %s185_s23, %s1811_s8  ;;  %s1943_s10 = smov [#allocation5]  }
  0x2e   : > { %s1816_s6 = sshll.u32 %s1943_s10, 4  ;;  %s1817_s6 = int_to_ptr.vmem [resolvable:$false] %s1816_s6 }
  0x2f   : > { %p1814_p1 = pnand %p1812_p12, %p1772_p3  ;;  %s1818_s9 = scalar_lea.vmem %s1817_s6, 1024 }
  0x30   : > { %p1819_p5 = scmp.lt.s32.totalorder %s185_s23, %s1817_s6  ;;  %p1820_p6 = scmp.lt.s32.totalorder %s1818_s9, %s1811_s8 }
  0x31   : > { %p1815_p2 = pneg %p1814_p1 }
  0x32   : > { %p1821_p7 = por %p1820_p6, %p1819_p5 }
  0x34   : > { %p1822_p10 = pnand %p1821_p7, %p1815_p2 }
  0x36   : > { %1825 = shalt.err (!%p1822_p10)
}
  0x37   : > { %s2414_s1 = smov 64   ;;  %s221_s16 = scalar_lea.vmem [#allocation10], %s2045_s29 }
  0x38   : > { %1665 = dma.hbm_to_vmem [thread:$0]  (!%p2052_p0), %s183_s21, 512, %s185_s23, %s172_s26, %s2414_s1, %s2414_s1, %s1942_s5  }
  0x39   : > { %s230_s28 = sshll.u32 %s221_s16, 4  ;;  %s1944_s6 = smov [#allocation10]   ;;  %s231_s28 = int_to_ptr.vmem [resolvable:$true] %s230_s28 }
  0x3a   : > { %s1839_s19 = scalar_lea.vmem %s231_s28, 512  ;;  %s1844_s22 = sshll.u32 %s1944_s6, 4  ;;  %s1845_s22 = int_to_ptr.vmem [resolvable:$false] %s1844_s22 }
  0x3b   : > { %p1840_p13 = scmp.ne.s32.totalorder %s231_s28, %s1839_s19  ;;  %s1846_s8 = scalar_lea.vmem %s1845_s22, 1024 }
  0x3c   : > { %p1847_p2 = scmp.lt.s32.totalorder %s231_s28, %s1845_s22  ;;  %p1848_p5 = scmp.lt.s32.totalorder %s1846_s8, %s1839_s19 }
  0x3d   : > { %p1842_p12 = pnand %p1840_p13, %p1772_p3 }
  0x3e   : > { %p1849_p6 = por %p1848_p5, %p1847_p2 }
  0x3f   : > { %p1843_p1 = pneg %p1842_p12 }
  0x41   : > { %p1850_p7 = pnand %p1849_p6, %p1843_p1 }
  0x43   : > { %1853 = shalt.err (!%p1850_p7)
}
  0x44   : > { %1671 = dma.hbm_to_vmem [thread:$0]  (!%p2052_p0), %s229_s20, 512, %s231_s28, %s2064_s11, %s2414_s1, %s2414_s1, %s1942_s5  }
  0x45   : > { %242 = sbr.rel (%p2081_p4) target bundleno = 903 (0x387), region = 32  ;;  %s2122_s21 = sand.u32 (!%p2081_p4), 1, %s1922_s13  }
  0x46   : > { %s2125_s4 = sshll.u32 (!%p2081_p4), %s2122_s21, 5  ;;  %s245_s23 = scalar_lea.sflag (!%p2081_p4), [#allocation6], %s2122_s21 }
  0x47   : > { %s2129_s10 = scalar_lea.vmem (!%p2081_p4), [#allocation5], %s2125_s4 }
  0x4a   : > { %1905 = dma.done.wait (%p2025_p8), %s245_s23, 512  }
  0x4b   : > { %1907 = vsyncadd (%p2025_p8), %s245_s23, 4294966784  ;;  %s253_s20 = sand.u32 1, %s2005_s18   ;;  %s257_s11 = scalar_lea.vmem [#allocation8], %s2125_s4 }
  0x4c   : > { %s254_s30 = scalar_lea.sflag [#allocation9], %s253_s20 }
  0x4d   : > { %1909 = dma.done.wait (%p2025_p8), %s254_s30, 1024  }
  0x4e   : > { %1911 = vsyncadd (%p2025_p8), %s254_s30, 4294966272  ;;  %vm316_vm0 = vcmask 261120   ;;  %v341_v0 = vlaneseq  ;;  %v1945_v1 = vmov 0.0   ;;  %v1946_v2 = vmov 1983009808   ;;  %s266_s18 = scalar_lea.vmem [#allocation10], %s2125_s4 }
  0x4f   : > { %1614 = vmatprep.subr.mxu0 %v1945_v1  ;;  %v339_v3 = vunpack.c.l.s4 %v1946_v2  ;;  %317 = vst.msk [vmem:[#allocation4] sm:$0xff] %vm316_vm0, %v1945_v1  ;;  %318 = vst.msk [vmem:[#allocation4 + $0x8] sm:$0xff] %vm316_vm0, %v1945_v1  ;;  %1619 = vmatprep.subr.mxu1 %v1945_v1  ;;  %vm1947_vm1 = vmmov 0   ;;  %v1948_v6 = vmov 1934713408   ;;  %vm307_vm2 = vcmask 7168  }
  0x50   : > { %319 = vst.msk [vmem:[#allocation4 + $0x10] sm:$0xff] %vm316_vm0, %v1945_v1  ;;  %320 = vst.msk [vmem:[#allocation4 + $0x18] sm:$0xff] %vm316_vm0, %v1945_v1  ;;  %1616 = vmatprep.mubr.msk.f32.mxu0 %vm1947_vm1, %v1945_v1  ;;  %1621 = vmatprep.mubr.msk.f32.mxu1 %vm1947_vm1, %v1945_v1  ;;  %v342_v5 = vshrl.u32 %v341_v0, 7  ;;  %v372_v7 = vunpack.c.l.s4 %v1948_v6  ;;  %v1738_v10 = vld [vmem:[%s257_s11] ss:$8 sps:$4 sm:$0xff]   ;;  %vm866_vm3 = vcmask 64512  }
  0x51   : > { %v340_v4 = vunpack.c.0.s8 %v339_v3  ;;  %v1739_v11 = vld [vmem:[%s257_s11 + $0x4] ss:$8 sps:$4 sm:$0xff]   ;;  %v1740_v12 = vld [vmem:[%s257_s11 + $0x10] ss:$8 sps:$4 sm:$0xff]   ;;  %v1741_v13 = vld [vmem:[%s257_s11 + $0x14] ss:$8 sps:$4 sm:$0xff]  }
  0x52   : > { %v373_v9 = vunpack.c.0.s8 %v372_v7  ;;  %v321_v15 = vld [vmem:[%s2129_s10] sm:$0xf]  ;;  %v322_v20 = vld [vmem:[%s2129_s10 + $0x4] sm:$0xf]  ;;  %v323_v21 = vld [vmem:[%s2129_s10 + $0x8] sm:$0xf] }
  0x53   : > { %v2155_v8 = vsub.s32 %v340_v4, %v342_v5  ;;  %v324_v22 = vld [vmem:[%s2129_s10 + $0xc] sm:$0xf]  ;;  %v325_v23 = vld [vmem:[%s2129_s10 + $0x10] sm:$0xf]  ;;  %v326_v24 = vld [vmem:[%s2129_s10 + $0x14] sm:$0xf] }
  0x54   : > { %v2159_v16 = vsub.s32 %v373_v9, %v342_v5  ;;  %v329_v25 = vmul.f32 0.17677669, %v321_v15  ;;  %v327_v28 = vld [vmem:[%s2129_s10 + $0x18] sm:$0xf]  ;;  %v328_v29 = vld [vmem:[%s2129_s10 + $0x1c] sm:$0xf] }
  0x55   : > { %v420_v14 = vrot.slane %v1738_v10, %v2155_v8  ;;  %v428_v17 = vrot.slane %v1739_v11, %v2155_v8  ;;  %v436_v18 = vrot.slane %v1740_v12, %v2155_v8  ;;  %v444_v19 = vrot.slane %v1741_v13, %v2155_v8  ;;  %312 = vst.msk [vmem:[#allocation3] sm:$0xff] %vm307_vm2, %v1945_v1  ;;  %s1597_s24 = sshll.u32 %s1930_s15, 9  ;;  %s298_s5 = scalar_lea.vmem [#allocation11], %s2125_s4 }
  0x56   : > { %v330_v30 = vmul.f32 0.17677669, %v322_v20  ;;  %v331_v31 = vmul.f32 0.17677669, %v323_v21  ;;  %v332_v32 = vmul.f32 0.17677669, %v324_v22  ;;  %s2331_s16 = scalar_lea.hbm %s2396_s3, %s1597_s24 }
  0x57   : > { %v445_v26 = vcombine.low %v420_v14, %v428_v17  ;;  %v461_v27 = vcombine.low %v436_v18, %v444_v19  ;;  %v333_v35 = vmul.f32 0.17677669, %v325_v23  ;;  %v334_v36 = vmul.f32 0.17677669, %v326_v24  ;;  %313 = vst.msk [vmem:[#allocation3 + $0x8] sm:$0xff] %vm307_vm2, %v1945_v1  ;;  %314 = vst.msk [vmem:[#allocation3 + $0x10] sm:$0xff] %vm307_vm2, %v1945_v1 }
  0x58   : > { %v335_v37 = vmul.f32 0.17677669, %v327_v28  ;;  %v336_v38 = vmul.f32 0.17677669, %v328_v29  ;;  %v337_v39 = vcombine.low %v329_v25, %v331_v31  ;;  %v345_v40 = vcombine.low %v330_v30, %v332_v32  ;;  %315 = vst.msk [vmem:[#allocation3 + $0x18] sm:$0xff] %vm307_vm2, %v1945_v1  ;;  %s1420_s7 = sshll.u32 %s298_s5, 4  ;;  %s2333_s7 = int_to_ptr.vmem [resolvable:$true] %s1420_s7 }
  0x59   : > { %v453_v33 = vrot.slane %v445_v26, %v2159_v16  ;;  %v469_v34 = vrot.slane %v461_v27, %v2159_v16  ;;  %v446_v41 = vcombine.high %v420_v14, %v428_v17  ;;  %v462_v42 = vcombine.high %v436_v18, %v444_v19  ;;  %s1405_s15 = scalar_lea.sflag [#allocation7], %s2122_s21  ;;  %s1854_s28 = scalar_lea.vmem %s2333_s7, 512 }
  0x5a   : > { %v344_v45 = vrot.slane %v337_v39, %v2155_v8  ;;  %v352_v46 = vrot.slane %v345_v40, %v2155_v8  ;;  %v353_v47 = vcombine.low %v333_v35, %v335_v37  ;;  %v361_v48 = vcombine.low %v334_v36, %v336_v38  ;;  %v1743_v36 = vld [vmem:[%s266_s18 + $0x4] ss:$8 sps:$4 sm:$0xff]   ;;  %v1744_v38 = vld [vmem:[%s266_s18 + $0x10] ss:$8 sps:$4 sm:$0xff]   ;;  %v1745_v39 = vld [vmem:[%s266_s18 + $0x14] ss:$8 sps:$4 sm:$0xff]   ;;  %p1855_p8 = scmp.ne.s32.totalorder %s2333_s7, %s1854_s28 }
  0x5b   : > { %v477_v43 = vcombine.low %v453_v33, %v469_v34  ;;  %v478_v44 = vcombine.high %v453_v33, %v469_v34  ;;  %v460_v53 = vrot.slane %v446_v41, %v2159_v16  ;;  %v476_v54 = vrot.slane %v462_v42, %v2159_v16  ;;  %v1742_v34 = vld [vmem:[%s266_s18] ss:$8 sps:$4 sm:$0xff]   ;;  %s1951_s19 = smov [#allocation11]  }
  0x5c   : > { %v360_v49 = vrot.slane %v353_v47, %v2155_v8  ;;  %v368_v50 = vrot.slane %v361_v48, %v2155_v8  ;;  %v369_v51 = vcombine.low %v344_v45, %v352_v46  ;;  %v370_v52 = vcombine.high %v344_v45, %v352_v46  ;;  %p1856_p0 = pnand %p1855_p8, %p2029_p9  ;;  %s1858_s6 = sshll.u32 %s1951_s19, 4  ;;  %s1859_s6 = int_to_ptr.vmem [resolvable:$false] %s1858_s6 }
  0x5d   : > { %1615 = vmatpush3.xpose.msk.msra.mxu0 %vm316_vm0, %v477_v43  ;;  %1620 = vmatpush3.xpose.msk.msra.mxu1 %vm316_vm0, %v478_v44  ;;  %v479_v61 = vcombine.low %v460_v53, %v476_v54  ;;  %v480_v0 = vcombine.high %v460_v53, %v476_v54  ;;  %v1949_v4 = vmov -inf   ;;  %v1950_v19 = vmov 0   ;;  %s1860_s22 = scalar_lea.vmem %s1859_s6, 1024  ;;  %p1861_p4 = scmp.lt.s32.totalorder %s2333_s7, %s1859_s6 }
  0x5e   : > { %1624 = vmatprep.subr.mxu0 %v1945_v1  ;;  %1629 = vmatprep.subr.mxu1 %v1945_v1  ;;  %v377_v55 = vrot.slane %v369_v51, %v2159_v16  ;;  %v385_v56 = vcombine.low %v360_v49, %v368_v50  ;;  %v386_v57 = vcombine.high %v360_v49, %v368_v50  ;;  %vm1395_vm4 = vcmask 257024   ;;  %p1857_p3 = pneg %p1856_p0  ;;  %p1862_p10 = scmp.lt.s32.totalorder %s1860_s22, %s1854_s28 }
  0x5f   : > { %v384_v59 = vrot.slane %v370_v52, %v2159_v16  ;;  %308 = vst.msk [vmem:[#allocation2] sm:$0xff] %vm307_vm2, %v1949_v4  ;;  %309 = vst.msk [vmem:[#allocation2 + $0x8] sm:$0xff] %vm307_vm2, %v1949_v4  ;;  %1736 = vset.pattern.permute.xlu0 %v1950_v19  ;;  %1737 = vset.pattern.permute.xlu1 %v1950_v19  ;;  %v496_v37 = vrot.slane %v1742_v34, %v2155_v8  ;;  %v930_v34 = vld [vmem:[#allocation3 + $0x18] sm:$0xff] }
  0x60   : > { %v393_v58 = vrot.slane %v385_v56, %v2159_v16  ;;  %v400_v60 = vrot.slane %v386_v57, %v2159_v16  ;;  %310 = vst.msk [vmem:[#allocation2 + $0x10] sm:$0xff] %vm307_vm2, %v1949_v4  ;;  %311 = vst.msk [vmem:[#allocation2 + $0x18] sm:$0xff] %vm307_vm2, %v1949_v4  ;;  %v504_v41 = vrot.slane %v1743_v36, %v2155_v8  ;;  %p1863_p13 = por %p1862_p10, %p1861_p4 }
  0x61   : > { %v512_v42 = vrot.slane %v1744_v38, %v2155_v8  ;;  %v520_v43 = vrot.slane %v1745_v39, %v2155_v8 }
  0x62   : > { %v401_v62 = vcombine.low %v377_v55, %v393_v58  ;;  %v402_v63 = vcombine.high %v377_v55, %v393_v58  ;;  %v403_v2 = vcombine.low %v384_v59, %v400_v60  ;;  %v404_v3 = vcombine.high %v384_v59, %v400_v60  ;;  %p1864_p12 = pnand %p1863_p13, %p1857_p3 }
  0x63   : > { %v521_v44 = vcombine.low %v496_v37, %v504_v41  ;;  %v537_v45 = vcombine.low %v512_v42, %v520_v43  ;;  %v522_v50 = vcombine.high %v496_v37, %v504_v41  ;;  %v538_v51 = vcombine.high %v512_v42, %v520_v43 }
  0x64   : > { %1617 = vmatmul.mubr.msk.f32.vlgmr.msra.gmra.mxu0 %vm316_vm0, %v401_v62  ;;  %1622 = vmatmul.mubr.msk.f32.vlgmr.msra.gmra.mxu1 %vm316_vm0, %v402_v63 }
  0x65   : > { %1625 = vmatpush3.xpose.msk.msra.mxu0 %vm316_vm0, %v479_v61  ;;  %1626 = vmatprep.mubr.msk.f32.mxu0 %vm1947_vm1, %v1945_v1  ;;  %v529_v46 = vrot.slane %v521_v44, %v2159_v16  ;;  %v545_v47 = vrot.slane %v537_v45, %v2159_v16  ;;  %v536_v52 = vrot.slane %v522_v50, %v2159_v16  ;;  %v957_v50 = vld [vmem:[#allocation4 + $0x8] sm:$0xff] }
  0x66   : > { %1630 = vmatpush3.xpose.msk.msra.mxu1 %vm316_vm0, %v480_v0  ;;  %1631 = vmatprep.mubr.msk.f32.mxu1 %vm1947_vm1, %v1945_v1  ;;  %v2231_v20 = vld [vmem:[#allocation2] sm:$0xff]  ;;  %v2236_v23 = vld [vmem:[#allocation2 + $0x8] sm:$0xff]  ;;  %v552_v53 = vrot.slane %v538_v51, %v2159_v16 }
  0x67   : > { %1634 = vmatprep.subr.mxu0 %v1945_v1  ;;  %1639 = vmatprep.subr.mxu1 %v1945_v1  ;;  %v2238_v24 = vld [vmem:[#allocation2 + $0x10] sm:$0xff]  ;;  %v2251_v30 = vld [vmem:[#allocation2 + $0x18] sm:$0xff]  ;;  %v553_v48 = vcombine.low %v529_v46, %v545_v47  ;;  %v554_v49 = vcombine.high %v529_v46, %v545_v47  ;;  %v956_v47 = vld [vmem:[#allocation4] sm:$0xff] }
  0x68   : > { %1627 = vmatmul.mubr.msk.f32.vlgmr.msra.gmra.mxu0 %vm316_vm0, %v403_v2  ;;  %v555_v54 = vcombine.low %v536_v52, %v552_v53  ;;  %v556_v55 = vcombine.high %v536_v52, %v552_v53 }
  0x69   : > { %1632 = vmatmul.mubr.msk.f32.vlgmr.msra.gmra.mxu1 %vm316_vm0, %v404_v3  ;;  %1636 = vmatprep.mubr.msk.f32.mxu0 %vm1947_vm1, %v1945_v1 }
  0x6a   : > { %1641 = vmatprep.mubr.msk.f32.mxu1 %vm1947_vm1, %v1945_v1  ;;  %1635 = vmatpush3.msra.mxu0 %v553_v48 }
  0x6b   : > { %1640 = vmatpush3.msra.mxu1 %v554_v49  ;;  %1644 = vmatprep.subr.mxu0 %v1945_v1 }
  0x6c   : > { %1649 = vmatprep.subr.mxu1 %v1945_v1 }
 0x124   : > { %v2215_v5 = vpop.f32.mrf.mxu0  ;;  %v2217_v6 = vpop.f32.mrf.mxu1 }
 0x125   : > { %v867_v7 = vsel %vm866_vm3, %v2215_v5, -inf  ;;  %v870_v11 = vsel %vm866_vm3, %v2217_v6, -inf }
 0x126   : > { %868 = vmax.xlane.f32.xlu0 %v867_v7  ;;  %v1618_v9 = vpop.f32.mrf.mxu0  ;;  %v1623_v10 = vpop.f32.mrf.mxu1 }
 0x128   : > { %v2223_v12 = vpop.f32.mrf.mxu0 }
 0x129   : > { %v2225_v13 = vpop.f32.mrf.mxu1  ;;  %v873_v14 = vsel %vm866_vm3, %v2223_v12, -inf }
 0x12a   : > { %871 = vmax.xlane.f32.xlu0 %v870_v11  ;;  %v1628_v15 = vpop.f32.mrf.mxu0  ;;  %874 = vmax.xlane.f32.xlu1 %v873_v14  ;;  %v876_v18 = vsel %vm866_vm3, %v2225_v13, -inf }
 0x12b   : > { %v1633_v17 = vpop.f32.mrf.mxu1 }
 0x12e   : > { %877 = vmax.xlane.f32.xlu1 %v876_v18 }
 0x1af   : > { %v869_v21 = vpop.xlane.xlu0 %868 }
 0x1b0   : > { %v2234_v22 = vmax.f32 %v2231_v20, %v869_v21 }
 0x1b2   : > { %v883_v25 = vsub.f32 %v2231_v20, %v2234_v22  ;;  %1284 = vst.msk [vmem:[#allocation2] sm:$0xff] %vm307_vm2, %v2234_v22  ;;  %897 = vperm.xlu0 %1736, %v2234_v22  }
 0x1b3   : > { %v872_v26 = vpop.xlane.xlu0 %871  ;;  %v875_v27 = vpop.xlane.xlu1 %874 }
 0x1b4   : > { %v2246_v28 = vmax.f32 %v2236_v23, %v872_v26  ;;  %v2249_v29 = vmax.f32 %v2238_v24, %v875_v27  ;;  %v887_v14 = vmul.f32 1.442695, %v883_v25  ;;  %v928_v27 = vld [vmem:[#allocation3 + $0x8] sm:$0xff] }
 0x1b6   : > { %v884_v31 = vsub.f32 %v2236_v23, %v2246_v28  ;;  %1285 = vst.msk [vmem:[#allocation2 + $0x8] sm:$0xff] %vm307_vm2, %v2246_v28  ;;  %902 = vperm.xlu1 %1737, %v2246_v28   ;;  %v885_v32 = vsub.f32 %v2238_v24, %v2249_v29  ;;  %1286 = vst.msk [vmem:[#allocation2 + $0x10] sm:$0xff] %vm307_vm2, %v2249_v29  ;;  %v927_v23 = vld [vmem:[#allocation3] sm:$0xff] }
 0x1b7   : > { %v878_v33 = vpop.xlane.xlu1 %877 }
 0x1b8   : > { %v2264_v35 = vmax.f32 %v2251_v30, %v878_v33  ;;  %v891_v17 = vmul.f32 1.442695, %v885_v32 }
 0x1ba   : > { %907 = vperm.xlu1 %1737, %v2249_v29   ;;  %v886_v40 = vsub.f32 %v2251_v30, %v2264_v35  ;;  %1287 = vst.msk [vmem:[#allocation2 + $0x18] sm:$0xff] %vm307_vm2, %v2264_v35  ;;  %v929_v30 = vld [vmem:[#allocation3 + $0x10] sm:$0xff] }
 0x1bc   : > { %v893_v18 = vmul.f32 1.442695, %v886_v40 }
 0x1be   : > { %912 = vperm.xlu1 %1737, %v2264_v35  }
 0x22d   : > { %v898_v56 = vpop.permute.xlu0 %897 }
 0x22e   : > { %v915_v57 = vsub.f32 %v2215_v5, %v898_v56 }
 0x230   : > { %v919_v58 = vmul.f32 1.442695, %v915_v57  ;;  %v958_v57 = vld [vmem:[#allocation4 + $0x10] sm:$0xff] }
 0x231   : > { %v903_v59 = vpop.permute.xlu1 %902 }
 0x232   : > { %1746 = vpow2.f32 %v919_v58  ;;  %v916_v60 = vsub.f32 %v2217_v6, %v903_v59 }
 0x234   : > { %v921_v61 = vmul.f32 1.442695, %v916_v60 }
 0x235   : > { %v908_v62 = vpop.permute.xlu1 %907 }
 0x236   : > { %1748 = vpow2.f32 %v921_v61  ;;  %v917_v63 = vsub.f32 %v2223_v12, %v908_v62  ;;  %v889_v12 = vmul.f32 1.442695, %v884_v31  ;;  %v959_v62 = vld [vmem:[#allocation4 + $0x18] sm:$0xff] }
 0x238   : > { %v923_v0 = vmul.f32 1.442695, %v917_v63 }
 0x239   : > { %v913_v2 = vpop.permute.xlu1 %912 }
 0x23a   : > { %1750 = vpow2.f32 %v923_v0  ;;  %v918_v3 = vsub.f32 %v2225_v13, %v913_v2 }
 0x23c   : > { %v925_v4 = vmul.f32 1.442695, %v918_v3 }
 0x23e   : > { %1752 = vpow2.f32 %v925_v4 }
 0x23f   : > { %v1747_v7 = vpop.eup %1746  ;;  %1754 = vpow2.f32 %v889_v12 }
 0x240   : > { %1637 = vmatmul.mubr.msk.f32.vlgmr.msra.gmra.mxu0 %vm866_vm3, %v1747_v7  ;;  %v935_v5 = vsel %vm866_vm3, %v1747_v7, 0.0  ;;  %1756 = vpow2.f32 %v887_v14 }
 0x241   : > { %936 = vadd.xlane.f32.xlu1 %v935_v5  ;;  %1645 = vmatpush3.msra.mxu0 %v555_v54  ;;  %1758 = vpow2.f32 %v891_v17 }
 0x242   : > { %1646 = vmatprep.mubr.msk.f32.mxu0 %vm1947_vm1, %v1945_v1  ;;  %1760 = vpow2.f32 %v893_v18 }
 0x243   : > { %v1749_v6 = vpop.eup %1748 }
 0x244   : > { %1642 = vmatmul.mubr.msk.f32.vlgmr.msra.gmra.mxu1 %vm866_vm3, %v1749_v6  ;;  %v938_v9 = vsel %vm866_vm3, %v1749_v6, 0.0 }
 0x245   : > { %939 = vadd.xlane.f32.xlu0 %v938_v9  ;;  %1650 = vmatpush3.msra.mxu1 %v556_v55 }
 0x246   : > { %1651 = vmatprep.mubr.msk.f32.mxu1 %vm1947_vm1, %v1945_v1 }
 0x247   : > { %v1751_v10 = vpop.eup %1750 }
 0x248   : > { %1647 = vmatmul.mubr.msk.f32.vlgmr.msra.gmra.mxu0 %vm866_vm3, %v1751_v10  ;;  %v941_v11 = vsel %vm866_vm3, %v1751_v10, 0.0 }
 0x249   : > { %942 = vadd.xlane.f32.xlu1 %v941_v11 }
 0x24b   : > { %v1753_v13 = vpop.eup %1752 }
 0x24c   : > { %1652 = vmatmul.mubr.msk.f32.vlgmr.msra.gmra.mxu1 %vm866_vm3, %v1753_v13  ;;  %v944_v15 = vsel %vm866_vm3, %v1753_v13, 0.0  ;;  %v1755_v19 = vpop.eup %1754 }
 0x24d   : > { %945 = vadd.xlane.f32.xlu1 %v944_v15  ;;  %v1757_v20 = vpop.eup %1756  ;;  %v932_v28 = vmul.f32 %v1755_v19, %v928_v27 }
 0x24e   : > { %v1759_v21 = vpop.eup %1758  ;;  %v931_v25 = vmul.f32 %v1757_v20, %v927_v23 }
 0x24f   : > { %v1761_v22 = vpop.eup %1760  ;;  %v933_v32 = vmul.f32 %v1759_v21, %v929_v30 }
 0x250   : > { %v934_v37 = vmul.f32 %v1761_v22, %v930_v34 }
 0x25b   : > { %967 = vperm.xlu0 %1736, %v1755_v19  }
 0x25e   : > { %962 = vperm.xlu1 %1737, %v1757_v20  }
 0x262   : > { %972 = vperm.xlu1 %1737, %v1759_v21  }
 0x266   : > { %977 = vperm.xlu1 %1737, %v1761_v22  }
 0x2ca   : > { %v937_v26 = vpop.xlane.xlu1 %936 }
 0x2cb   : > { %v947_v24 = vadd.f32 %v937_v26, %v931_v25 }
 0x2cd   : > { %952 = vst.msk [vmem:[#allocation3] sm:$0xff] %vm307_vm2, %v947_v24 }
 0x2ce   : > { %v940_v29 = vpop.xlane.xlu0 %939 }
 0x2cf   : > { %v948_v31 = vadd.f32 %v940_v29, %v932_v28 }
 0x2d1   : > { %953 = vst.msk [vmem:[#allocation3 + $0x8] sm:$0xff] %vm307_vm2, %v948_v31 }
 0x2d2   : > { %v943_v33 = vpop.xlane.xlu1 %942 }
 0x2d3   : > { %v949_v35 = vadd.f32 %v943_v33, %v933_v32 }
 0x2d4   : > { %v1291_v36 = vld [vmem:[#allocation3] sm:$0xff] }
 0x2d5   : > { %954 = vst.msk [vmem:[#allocation3 + $0x10] sm:$0xff] %vm307_vm2, %v949_v35  ;;  %1762 = vrcp.f32 %v1291_v36 }
 0x2d6   : > { %v946_v38 = vpop.xlane.xlu1 %945  ;;  %v968_v51 = vpop.permute.xlu0 %967 }
 0x2d7   : > { %v950_v39 = vadd.f32 %v946_v38, %v934_v37  ;;  %v981_v56 = vmul.f32 %v968_v51, %v957_v50 }
 0x2d8   : > { %v1292_v40 = vld [vmem:[#allocation3 + $0x8] sm:$0xff] }
 0x2d9   : > { %955 = vst.msk [vmem:[#allocation3 + $0x18] sm:$0xff] %vm307_vm2, %v950_v39  ;;  %1764 = vrcp.f32 %v1292_v40 }
 0x2da   : > { %v963_v48 = vpop.permute.xlu1 %962 }
 0x2db   : > { %v980_v49 = vmul.f32 %v963_v48, %v956_v47 }
 0x2dc   : > { %v1293_v41 = vld [vmem:[#allocation3 + $0x10] sm:$0xff] }
 0x2dd   : > { %1766 = vrcp.f32 %v1293_v41 }
 0x2de   : > { %v973_v54 = vpop.permute.xlu1 %972 }
 0x2df   : > { %v982_v61 = vmul.f32 %v973_v54, %v958_v57 }
 0x2e0   : > { %v1294_v42 = vld [vmem:[#allocation3 + $0x18] sm:$0xff] }
 0x2e1   : > { %1768 = vrcp.f32 %v1294_v42 }
 0x2e2   : > { %v1763_v43 = vpop.eup %1762  ;;  %v978_v63 = vpop.permute.xlu1 %977 }
 0x2e3   : > { %1305 = vperm.xlu1 %1737, %v1763_v43   ;;  %v983_v4 = vmul.f32 %v978_v63, %v959_v62 }
 0x2e6   : > { %v1765_v44 = vpop.eup %1764 }
 0x2e7   : > { %1310 = vperm.xlu0 %1736, %v1765_v44  }
 0x2ea   : > { %v1767_v45 = vpop.eup %1766 }
 0x2eb   : > { %1315 = vperm.xlu1 %1737, %v1767_v45  }
 0x2ee   : > { %v1769_v46 = vpop.eup %1768 }
 0x2ef   : > { %1320 = vperm.xlu0 %1736, %v1769_v46  }
 0x300   : > { %v1053_v52 = vpop.f32.mrf.mxu0 }
 0x301   : > { %v1276_v53 = vadd.f32 %v1053_v52, %v980_v49 }
 0x302   : > { %v1638_v55 = vpop.f32.mrf.mxu0 }
 0x303   : > { %1280 = vst.msk [vmem:[#allocation4] sm:$0xff] %vm316_vm0, %v1276_v53 }
 0x304   : > { %v1126_v58 = vpop.f32.mrf.mxu1 }
 0x305   : > { %v1277_v59 = vadd.f32 %v1126_v58, %v981_v56 }
 0x306   : > { %v1643_v60 = vpop.f32.mrf.mxu1 }
 0x307   : > { %1281 = vst.msk [vmem:[#allocation4 + $0x8] sm:$0xff] %vm316_vm0, %v1277_v59 }
 0x308   : > { %v1199_v0 = vpop.f32.mrf.mxu0 }
 0x309   : > { %v1278_v2 = vadd.f32 %v1199_v0, %v982_v61 }
 0x30a   : > { %v1648_v3 = vpop.f32.mrf.mxu0  ;;  %v1299_v14 = vld [vmem:[#allocation4] sm:$0xff] }
 0x30b   : > { %1282 = vst.msk [vmem:[#allocation4 + $0x10] sm:$0xff] %vm316_vm0, %v1278_v2 }
 0x30c   : > { %v1272_v7 = vpop.f32.mrf.mxu1 }
 0x30d   : > { %v1279_v5 = vadd.f32 %v1272_v7, %v983_v4 }
 0x30e   : > { %v1653_v6 = vpop.f32.mrf.mxu1  ;;  %v1300_v17 = vld [vmem:[#allocation4 + $0x8] sm:$0xff] }
 0x30f   : > { %1283 = vst.msk [vmem:[#allocation4 + $0x18] sm:$0xff] %vm316_vm0, %v1279_v5 }
 0x312   : > { %v1301_v11 = vld [vmem:[#allocation4 + $0x10] sm:$0xff] }
 0x316   : > { %v1302_v19 = vld [vmem:[#allocation4 + $0x18] sm:$0xff] }
 0x35e   : > { %v1306_v9 = vpop.permute.xlu1 %1305 }
 0x35f   : > { %v1323_v15 = vmul.f32 %v1306_v9, %v1299_v14 }
 0x362   : > { %v1311_v10 = vpop.permute.xlu0 %1310 }
 0x363   : > { %v1324_v20 = vmul.f32 %v1311_v10, %v1300_v17 }
 0x366   : > { %v1316_v12 = vpop.permute.xlu1 %1315 }
 0x367   : > { %v1325_v13 = vmul.f32 %v1316_v12, %v1301_v11 }
 0x369   : > { %v1327_v21 = vcombine.low %v1323_v15, %v1325_v13  ;;  %v1328_v22 = vcombine.high %v1323_v15, %v1325_v13 }
 0x36a   : > { %v1321_v18 = vpop.permute.xlu0 %1320 }
 0x36b   : > { %v1326_v23 = vmul.f32 %v1321_v18, %v1302_v19  ;;  %v1335_v27 = vrot.slane %v1327_v21, %v2155_v8  ;;  %v1342_v24 = vrot.slane %v1328_v22, %v2155_v8 }
 0x36d   : > { %v1343_v25 = vcombine.low %v1324_v20, %v1326_v23  ;;  %v1344_v26 = vcombine.high %v1324_v20, %v1326_v23 }
 0x36f   : > { %v1351_v28 = vrot.slane %v1343_v25, %v2155_v8  ;;  %v1358_v29 = vrot.slane %v1344_v26, %v2155_v8 }
 0x371   : > { %v1359_v30 = vcombine.low %v1335_v27, %v1351_v28  ;;  %v1360_v31 = vcombine.high %v1335_v27, %v1351_v28  ;;  %v1375_v32 = vcombine.low %v1342_v24, %v1358_v29  ;;  %v1376_v33 = vcombine.high %v1342_v24, %v1358_v29 }
 0x373   : > { %v1367_v34 = vrot.slane %v1359_v30, %v2159_v16  ;;  %v1374_v35 = vrot.slane %v1360_v31, %v2159_v16  ;;  %v1383_v36 = vrot.slane %v1375_v32, %v2159_v16  ;;  %v1390_v37 = vrot.slane %v1376_v33, %v2159_v16 }
 0x375   : > { %v1391_v8 = vcombine.high %v1367_v34, %v1945_v1  ;;  %v1392_v38 = vcombine.high %v1374_v35, %v1945_v1  ;;  %v1393_v39 = vcombine.high %v1383_v36, %v1945_v1  ;;  %v1394_v40 = vcombine.high %v1390_v37, %v1945_v1  ;;  %1396 = vst.msk [vmem:[%s298_s5] sm:$0xf] %vm1395_vm4, %v1367_v34 }
 0x376   : > { %1398 = vst.msk [vmem:[%s298_s5 + $0x8] sm:$0xf] %vm1395_vm4, %v1374_v35  ;;  %1400 = vst.msk [vmem:[%s298_s5 + $0x10] sm:$0xf] %vm1395_vm4, %v1383_v36 }
 0x377   : > { %1402 = vst.msk [vmem:[%s298_s5 + $0x18] sm:$0xf] %vm1395_vm4, %v1390_v37  ;;  %1397 = vst.msk [vmem:[%s298_s5 + $0x4] sm:$0xf] %vm1395_vm4, %v1391_v8 }
 0x378   : > { %1399 = vst.msk [vmem:[%s298_s5 + $0xc] sm:$0xf] %vm1395_vm4, %v1392_v38  ;;  %1401 = vst.msk [vmem:[%s298_s5 + $0x14] sm:$0xf] %vm1395_vm4, %v1393_v39 }
 0x379   : > { %1403 = vst.msk [vmem:[%s298_s5 + $0x1c] sm:$0xf] %vm1395_vm4, %v1394_v40 }
 0x37a   : > { %1867 = shalt.err (!%p1864_p12)
}
 0x37b   : > { %s1868_s8 = scalar_lea.hbm %s2331_s16, 512  ;;  %s1872_s4 = scalar_lea.hbm %s2396_s3, 1024 }
 0x37c   : > { %p1869_p1 = scmp.ne.s32.totalorder %s2331_s16, %s1868_s8  ;;  %p1873_p6 = scmp.lt.s32.totalorder %s2331_s16, %s2396_s3 }
 0x37d   : > { %p1874_p7 = scmp.lt.s32.totalorder %s1872_s4, %s1868_s8 }
 0x37e   : > { %p1870_p2 = pnand %p1869_p1, %p2029_p9 }
 0x37f   : > { %p1875_p8 = por %p1874_p7, %p1873_p6 }
 0x380   : > { %p1871_p5 = pneg %p1870_p2 }
 0x382   : > { %p1876_p0 = pnand %p1875_p8, %p1871_p5 }
 0x384   : > { %1879 = shalt.err (!%p1876_p0)
}
 0x385   : > { %s1952_s20 = smov 64   ;;  %s1953_s30 = smov 4  }
 0x386   : > { %1660 = dma.vmem_to_hbm [thread:$0]  (%p2029_p9), %s2333_s7, 512, %s2331_s16, %s1405_s15, %s1952_s20, %s1952_s20, %s1953_s30  }
 0x387 PF: > { %s1435_s11 = sand.u32 1, %s1918_s12   ;;  %p2415_p3 = scmp.ge.s32.totalorder %s1938_s17, 2 }
 0x388   : > { %s1436_s18 = scalar_lea.sflag [#allocation7], %s1435_s11 }
 0x389   : > { %p1673_p4 = pnand %p2415_p3, %p2036_p11 }
 0x38b   : > { %p1674_p10 = pneg %p1673_p4 }
 0x38d   : > { %1913 = dma.done.wait (%p1674_p10), %s1436_s18, 512  }
 0x38e   : > { %1915 = vsyncadd (%p1674_p10), %s1436_s18, 4294966784  ;;  %s22_s17 = sadd.s32 1, %s1938_s17   ;;  %s2416_s25 = sld [smem:[#allocation17_spill]] }
 0x38f   : > { %p19_p13 = scmp.ge.s32.totalorder %s22_s17, 4   ;;  %s2417_s15 = sld [smem:[#allocation15_spill]] }
 0x390   : > { %s2418_s16 = sld [smem:[#allocation16_spill]]  ;;  %s2419_s12 = smov %s1922_s13 }
 0x391   : > { %s2420_s13 = smov %s1926_s14  ;;  %21 = sbr.rel (!%p19_p13) target bundleno = 10 (0xa), region = 109 }
 0x394   : > { %s2421_s14 = smov %s2416_s25 }
 0x396   :  { %1441 = vsyncpa [#allocation6], 1 }
 0x397   :  { %1443 = vsyncpa [#allocation6 + $0x1], 1 }
 0x398   :  { %1444 = vsyncpa [#allocation9], 1 }
 0x399   :  { %1446 = vsyncpa [#allocation9 + $0x1], 1 }
 0x39a   :  { %1447 = vsyncpa [#allocation7], 1 }
 0x39b   :  { %1449 = vsyncpa [#allocation7 + $0x1], 1 }

</bundles_post_ra>
